<compile_context>
chip_gen: v6e
topology: v6e:2x2x1
jax: 0.10.0
libtpu: 0.0.40
codegen_flags: <defaults>
</compile_context>

<pallas_src>
import jax
import jax.numpy as jnp
from jax.experimental import pallas as pl
from jax.experimental.pallas import tpu as pltpu


def _head(logits2, lab_col):
    """Fused softmax + per-row NLL for one 2-class head.

    logits2: (TILE_B, 2) f32, lab_col: (TILE_B, 1) int32.
    Returns (prob (TILE_B, 2), per-row NLL (TILE_B, 1)).
    """
    m = jnp.max(logits2, axis=-1, keepdims=True)               # (TILE_B, 1)
    e = jnp.exp(logits2 - m)                                    # (TILE_B, 2)
    s = jnp.sum(e, axis=-1, keepdims=True)                      # (TILE_B, 1)
    # Probabilities: EUP approx reciprocal (otherwise-idle slot, ~1e-3 rel).
    prob = e * pl.reciprocal(s, approx=True)
    # Loss path stays exact: lse = m + log(s).
    lse = m + jnp.log(s)
    # 2-class select instead of iota/one-hot gather.
    picked = jnp.where(lab_col == 0, logits2[:, 0:1], logits2[:, 1:2])
    return prob, lse - picked


def bert_mlp_kernel(vec_ref, w_ref, b_ref, lab_ref, p1_ref, p2_ref, nll_ref):
    # vec_ref: (TILE_B, H) bf16   w_ref: (4, H) bf16   b_ref: (1, 4) f32
    # lab_ref: (TILE_B, 2) i32
    # Single fused MXU contraction for both classifier heads:
    #   (TILE_B, H) x (4, H) -> (TILE_B, 4), f32 accumulation.
    logits = jax.lax.dot_general(
        vec_ref[...], w_ref[...],
        dimension_numbers=(((1,), (1,)), ((), ())),
        preferred_element_type=jnp.float32) + b_ref[...]

    labels = lab_ref[...]                                       # (TILE_B, 2)

    p1, nll1 = _head(logits[:, 0:2], labels[:, 0:1])            # head 1 (labels)
    p2, nll2 = _head(logits[:, 2:4], labels[:, 1:2])            # head 2 (corrupt labels)

    p1_ref[...] = p1
    p2_ref[...] = p2
    nll_ref[...] = jnp.concatenate([nll1, nll2], axis=-1)       # (TILE_B, 2)


def fuse_classifier_params(w1, b1, w2, b2):
    """One-time parameter prep (hoisted out of the per-call hot path).

    w1/w2: (2, H) nn.Linear weights; b1/b2: (2,) biases.
    Returns (w: (4, H) bf16 lane-dense rows, b: (1, 4) f32).
    """
    w = jnp.concatenate([w1, w2], axis=0).astype(jnp.bfloat16)   # (4, H)
    b = jnp.concatenate([b1, b2], axis=0).reshape(1, 4).astype(jnp.float32)
    return w, b


@jax.jit
def bert_mlp_forward(vec, w, b, labels, corrupt_labels):
    """vec: (B, H) float; w: (4, H) bf16 fused weight; b: (1, 4) f32 fused bias."""
    B, H = vec.shape

    # Batch tile: big enough (>=512 rows when available) to sit near the HBM
    # roofline, small enough that double-buffered bf16 vec tiles stay far inside
    # every generation's scoped VMEM (2 * 1024 * 1024 * 2B = 4 MiB at H=1024).
    tile_b = B if B <= 1024 else 1024
    num_tiles = pl.cdiv(B, tile_b)

    # TODO(synk): in production the encoder should emit `vec` in bf16 directly;
    # here the cast lives inside the same jit so the kernel streams half the bytes.
    vec_bf = vec.astype(jnp.bfloat16)
    lab = jnp.stack([labels.astype(jnp.int32),
                     corrupt_labels.astype(jnp.int32)], axis=1)  # (B, 2)

    cost = pl.CostEstimate(
        flops=2 * B * H * 4,
        transcendentals=6 * B,                                   # exp/log/recip per head
        bytes_accessed=B * H * 2 + 4 * H * 2 + B * 2 * 4 + 3 * B * 2 * 4)

    p1, p2, nll = pl.pallas_call(
        bert_mlp_kernel,
        out_shape=(
            jax.ShapeDtypeStruct((B, 2), jnp.float32),           # prob   (head 1)
            jax.ShapeDtypeStruct((B, 2), jnp.float32),           # c_prob (head 2)
            jax.ShapeDtypeStruct((B, 2), jnp.float32),           # per-row NLLs
        ),
        grid_spec=pltpu.PrefetchScalarGridSpec(
            num_scalar_prefetch=0,
            grid=(num_tiles,),
            in_specs=[
                pl.BlockSpec((tile_b, H), lambda i: (i, 0)),     # vec (streamed)
                pl.BlockSpec((4, H), lambda i: (0, 0)),          # fused W (fetched once)
                pl.BlockSpec((1, 4), lambda i: (0, 0)),          # fused bias
                pl.BlockSpec((tile_b, 2), lambda i: (i, 0)),     # packed labels
            ],
            out_specs=(
                pl.BlockSpec((tile_b, 2), lambda i: (i, 0)),
                pl.BlockSpec((tile_b, 2), lambda i: (i, 0)),
                pl.BlockSpec((tile_b, 2), lambda i: (i, 0)),
            ),
        ),
        compiler_params=pltpu.CompilerParams(
            dimension_semantics=("parallel",)),                  # v7x: both TensorCores
        cost_estimate=cost,
    )(vec_bf, w, b, lab)

    # Cross-tile loss reduction outside the grid: keeps the batch axis parallel
    # (no shared accumulator / write race) and is an exact mean over real rows.
    loss = jnp.sum(nll) * (1.0 / B)
    return {"loss": loss, "logits": p1, "c_logits": p2}


def _reference(vec, w1, b1, w2, b2, labels, corrupt_labels):
    logits1 = vec @ w1.T + b1
    logits2 = vec @ w2.T + b2
    prob = jax.nn.softmax(logits1, -1)
    c_prob = jax.nn.softmax(logits2, -1)

    def ce(logits, lab):
        logp = jax.nn.log_softmax(logits, -1)
        return -jnp.mean(jnp.take_along_axis(logp, lab[:, None], axis=-1))

    loss = ce(logits1, labels) + ce(logits2, corrupt_labels)
    return {"loss": loss, "logits": prob, "c_logits": c_prob}


if __name__ == "__main__":
    B, S, H = 2, 8, 32   # batch, seq, hidden_dim (config.hidden_dim)

    key = jax.random.PRNGKey(0)
    k_hs, k_w1, k_b1, k_w2, k_b2, k_lab, k_clab = jax.random.split(key, 7)

    # Synthetic encoder output.
    # TODO(synk): the HuggingFace T5/BART/RoBERTa encoder + tokenizer are out of
    # scope for a Pallas translation; we start from its pooled output.
    hidden_states = jax.random.normal(k_hs, (B, S, H), dtype=jnp.float32)
    vec = hidden_states[:, 0, :]                               # RoBERTa-path pooling

    # Classifier params in nn.Linear(hidden_dim, 2) layout: weight (2, H), bias (2,).
    w1 = jax.random.normal(k_w1, (2, H), dtype=jnp.float32) * 0.05
    b1 = jax.random.normal(k_b1, (2,), dtype=jnp.float32) * 0.05
    w2 = jax.random.normal(k_w2, (2, H), dtype=jnp.float32) * 0.05
    b2 = jax.random.normal(k_b2, (2,), dtype=jnp.float32) * 0.05

    labels = jax.random.randint(k_lab, (B,), 0, 2, dtype=jnp.int32)
    corrupt_labels = jax.random.randint(k_clab, (B,), 0, 2, dtype=jnp.int32)

    # One-time parameter fusion (not in the per-step hot path).
    w_fused, b_fused = fuse_classifier_params(w1, b1, w2, b2)

    out = bert_mlp_forward(vec, w_fused, b_fused, labels, corrupt_labels)
    jax.block_until_ready(out)

    ref = _reference(vec, w1, b1, w2, b2, labels, corrupt_labels)
    # Tolerances cover (a) bf16 MXU inputs vs the f32 reference matmul and
    # (b) the EUP approx reciprocal (~1e-3 rel) used only in the probability path.
    assert jnp.allclose(out["logits"], ref["logits"], atol=5e-3)
    assert jnp.allclose(out["c_logits"], ref["c_logits"], atol=5e-3)
    assert jnp.allclose(out["loss"], ref["loss"], atol=3e-2)

    print("KERNEL_OK")
</pallas_src>

<mosaic_0001>
module attributes {stable_mosaic.version = 11 : i64} {
  func.func @bert_mlp_kernel(%arg0: i32, %arg1: memref<2x32xbf16, #tpu.memory_space<vmem>>, %arg2: memref<4x32xbf16, #tpu.memory_space<vmem>>, %arg3: memref<1x4xf32, #tpu.memory_space<vmem>>, %arg4: memref<2x2xi32, #tpu.memory_space<vmem>>, %arg5: memref<2x2xf32, #tpu.memory_space<vmem>>, %arg6: memref<2x2xf32, #tpu.memory_space<vmem>>, %arg7: memref<2x2xf32, #tpu.memory_space<vmem>>) attributes {dimension_semantics = [#tpu.dimension_semantics<parallel>], iteration_bounds = array<i64: 1>, scalar_prefetch = 0 : i64, scratch_operands = 0 : i64, tpu.core_type = #tpu.core_type<tc>, window_params = [{transform_indices = @transform_0, window_bounds = array<i64: 2, 32>}, {pipeline_mode = #tpu.pipeline_mode<synchronous>, transform_indices = @transform_1, window_bounds = array<i64: 4, 32>}, {pipeline_mode = #tpu.pipeline_mode<synchronous>, transform_indices = @transform_2, window_bounds = array<i64: 1, 4>}, {transform_indices = @transform_3, window_bounds = array<i64: 2, 2>}, {transform_indices = @transform_4, window_bounds = array<i64: 2, 2>}, {transform_indices = @transform_5, window_bounds = array<i64: 2, 2>}, {transform_indices = @transform_6, window_bounds = array<i64: 2, 2>}]} {
    %c0 = arith.constant 0 : index
    %c0_0 = arith.constant 0 : index
    %0 = vector.load %arg1[%c0, %c0_0] : memref<2x32xbf16, #tpu.memory_space<vmem>>, vector<2x32xbf16>
    %c0_1 = arith.constant 0 : index
    %c0_2 = arith.constant 0 : index
    %1 = vector.load %arg2[%c0_1, %c0_2] : memref<4x32xbf16, #tpu.memory_space<vmem>>, vector<4x32xbf16>
    %cst = arith.constant dense<0.000000e+00> : vector<2x4xf32>
    %2 = tpu.matmul %0, %1, %cst {dimension_numbers = #tpu.dot_dimension_numbers<[1], [1], [0], [0], [0, 0, 1, 0], [], []>} : vector<2x32xbf16>, vector<4x32xbf16>, vector<2x4xf32> -> vector<2x4xf32>
    %c0_3 = arith.constant 0 : index
    %c0_4 = arith.constant 0 : index
    %3 = vector.load %arg3[%c0_3, %c0_4] : memref<1x4xf32, #tpu.memory_space<vmem>>, vector<1x4xf32>
    %4 = vector.broadcast %3 : vector<1x4xf32> to vector<2x4xf32>
    %5 = arith.addf %2, %4 : vector<2x4xf32>
    %c0_5 = arith.constant 0 : index
    %c0_6 = arith.constant 0 : index
    %6 = vector.load %arg4[%c0_5, %c0_6] : memref<2x2xi32, #tpu.memory_space<vmem>>, vector<2x2xi32>
    %7 = vector.extract_strided_slice %5 {offsets = [0, 0], sizes = [2, 2], strides = [1, 1]} : vector<2x4xf32> to vector<2x2xf32>
    %8 = vector.extract_strided_slice %6 {offsets = [0, 0], sizes = [2, 1], strides = [1, 1]} : vector<2x2xi32> to vector<2x1xi32>
    %cst_7 = arith.constant dense<0xFF800000> : vector<2xf32>
    %9 = vector.multi_reduction <maximumf>, %7, %cst_7 [1] : vector<2x2xf32> to vector<2xf32>
    %10 = vector.shape_cast %9 : vector<2xf32> to vector<2x1xf32>
    %11 = vector.broadcast %10 : vector<2x1xf32> to vector<2x2xf32>
    %12 = arith.subf %7, %11 : vector<2x2xf32>
    %13 = math.exp %12 : vector<2x2xf32>
    %cst_8 = arith.constant dense<0.000000e+00> : vector<2xf32>
    %14 = vector.multi_reduction <add>, %13, %cst_8 [1] : vector<2x2xf32> to vector<2xf32>
    %15 = vector.shape_cast %14 : vector<2xf32> to vector<2x1xf32>
    %16 = tpu.reciprocal %15 {approx = true} : vector<2x1xf32> -> vector<2x1xf32>
    %17 = vector.broadcast %16 : vector<2x1xf32> to vector<2x2xf32>
    %18 = arith.mulf %13, %17 : vector<2x2xf32>
    %19 = math.log %15 : vector<2x1xf32>
    %20 = arith.addf %10, %19 : vector<2x1xf32>
    %c0_i32 = arith.constant 0 : i32
    %21 = vector.broadcast %c0_i32 : i32 to vector<2x1xi32>
    %22 = arith.cmpi eq, %8, %21 : vector<2x1xi32>
    %23 = vector.extract_strided_slice %7 {offsets = [0, 0], sizes = [2, 1], strides = [1, 1]} : vector<2x2xf32> to vector<2x1xf32>
    %24 = vector.extract_strided_slice %7 {offsets = [0, 1], sizes = [2, 1], strides = [1, 1]} : vector<2x2xf32> to vector<2x1xf32>
    %25 = arith.select %22, %23, %24 : vector<2x1xi1>, vector<2x1xf32>
    %26 = arith.subf %20, %25 : vector<2x1xf32>
    %27 = vector.extract_strided_slice %5 {offsets = [0, 2], sizes = [2, 2], strides = [1, 1]} : vector<2x4xf32> to vector<2x2xf32>
    %28 = vector.extract_strided_slice %6 {offsets = [0, 1], sizes = [2, 1], strides = [1, 1]} : vector<2x2xi32> to vector<2x1xi32>
    %cst_9 = arith.constant dense<0xFF800000> : vector<2xf32>
    %29 = vector.multi_reduction <maximumf>, %27, %cst_9 [1] : vector<2x2xf32> to vector<2xf32>
    %30 = vector.shape_cast %29 : vector<2xf32> to vector<2x1xf32>
    %31 = vector.broadcast %30 : vector<2x1xf32> to vector<2x2xf32>
    %32 = arith.subf %27, %31 : vector<2x2xf32>
    %33 = math.exp %32 : vector<2x2xf32>
    %cst_10 = arith.constant dense<0.000000e+00> : vector<2xf32>
    %34 = vector.multi_reduction <add>, %33, %cst_10 [1] : vector<2x2xf32> to vector<2xf32>
    %35 = vector.shape_cast %34 : vector<2xf32> to vector<2x1xf32>
    %36 = tpu.reciprocal %35 {approx = true} : vector<2x1xf32> -> vector<2x1xf32>
    %37 = vector.broadcast %36 : vector<2x1xf32> to vector<2x2xf32>
    %38 = arith.mulf %33, %37 : vector<2x2xf32>
    %39 = math.log %35 : vector<2x1xf32>
    %40 = arith.addf %30, %39 : vector<2x1xf32>
    %c0_i32_11 = arith.constant 0 : i32
    %41 = vector.broadcast %c0_i32_11 : i32 to vector<2x1xi32>
    %42 = arith.cmpi eq, %28, %41 : vector<2x1xi32>
    %43 = vector.extract_strided_slice %27 {offsets = [0, 0], sizes = [2, 1], strides = [1, 1]} : vector<2x2xf32> to vector<2x1xf32>
    %44 = vector.extract_strided_slice %27 {offsets = [0, 1], sizes = [2, 1], strides = [1, 1]} : vector<2x2xf32> to vector<2x1xf32>
    %45 = arith.select %42, %43, %44 : vector<2x1xi1>, vector<2x1xf32>
    %46 = arith.subf %40, %45 : vector<2x1xf32>
    %c0_12 = arith.constant 0 : index
    %c0_13 = arith.constant 0 : index
    %47 = vector.load %arg5[%c0_12, %c0_13] : memref<2x2xf32, #tpu.memory_space<vmem>>, vector<2x2xf32>
    tpu.vector_store %arg5[%c0_12, %c0_13], %18 {strides = array<i32>} : memref<2x2xf32, #tpu.memory_space<vmem>>, vector<2x2xf32>,
    %c0_14 = arith.constant 0 : index
    %c0_15 = arith.constant 0 : index
    %48 = vector.load %arg6[%c0_14, %c0_15] : memref<2x2xf32, #tpu.memory_space<vmem>>, vector<2x2xf32>
    tpu.vector_store %arg6[%c0_14, %c0_15], %38 {strides = array<i32>} : memref<2x2xf32, #tpu.memory_space<vmem>>, vector<2x2xf32>,
    %49 = tpu.concatenate %26, %46 in 1 : vector<2x1xf32>, vector<2x1xf32> -> vector<2x2xf32>
    %c0_16 = arith.constant 0 : index
    %c0_17 = arith.constant 0 : index
    %50 = vector.load %arg7[%c0_16, %c0_17] : memref<2x2xf32, #tpu.memory_space<vmem>>, vector<2x2xf32>
    tpu.vector_store %arg7[%c0_16, %c0_17], %49 {strides = array<i32>} : memref<2x2xf32, #tpu.memory_space<vmem>>, vector<2x2xf32>,
    return
  }
  func.func @transform_0(%arg0: i32) -> (i32, i32) {
    %c0_i32 = arith.constant 0 : i32
    %c0_i32_0 = arith.constant 0 : i32
    return %arg0, %c0_i32 : i32, i32
  }
  func.func @transform_1(%arg0: i32) -> (i32, i32) {
    %c0_i32 = arith.constant 0 : i32
    %c0_i32_0 = arith.constant 0 : i32
    %c0_i32_1 = arith.constant 0 : i32
    return %c0_i32, %c0_i32_0 : i32, i32
  }
  func.func @transform_2(%arg0: i32) -> (i32, i32) {
    %c0_i32 = arith.constant 0 : i32
    %c0_i32_0 = arith.constant 0 : i32
    %c0_i32_1 = arith.constant 0 : i32
    return %c0_i32, %c0_i32_0 : i32, i32
  }
  func.func @transform_3(%arg0: i32) -> (i32, i32) {
    %c0_i32 = arith.constant 0 : i32
    %c0_i32_0 = arith.constant 0 : i32
    return %arg0, %c0_i32 : i32, i32
  }
  func.func @transform_4(%arg0: i32) -> (i32, i32) {
    %c0_i32 = arith.constant 0 : i32
    %c0_i32_0 = arith.constant 0 : i32
    return %arg0, %c0_i32 : i32, i32
  }
  func.func @transform_5(%arg0: i32) -> (i32, i32) {
    %c0_i32 = arith.constant 0 : i32
    %c0_i32_0 = arith.constant 0 : i32
    return %arg0, %c0_i32 : i32, i32
  }
  func.func @transform_6(%arg0: i32) -> (i32, i32) {
    %c0_i32 = arith.constant 0 : i32
    %c0_i32_0 = arith.constant 0 : i32
    return %arg0, %c0_i32 : i32, i32
  }
}

</mosaic_0001>

<bundles_post_ra>
// kernel: bert_mlp_forward.1
= control target key start
LH: loop header
LB: loop body
LE: loop exit
PB: predicated region body
PF: predicated region fallthrough
CT: control target
= control target key end

     0   :  { %12 = vsyncpa [#allocation3], 0  ;;  %vm32_vm0 = vcmask 261120   ;;  %v239_v1 = vmov 0.0   ;;  %vm240_vm1 = vmmov 0   ;;  %s318_s0 = inlined_call_operand.vmem [shape: bf16[2,32], index: 0, kind: input, shape index: {}]   ;;  %s319_s1 = inlined_call_operand.vmem [shape: bf16[4,32], index: 1, kind: input, shape index: {}]   ;;  %s320_s2 = inlined_call_operand.vmem [shape: f32[1,4], index: 2, kind: input, shape index: {}]   ;;  %s321_s3 = inlined_call_operand.vmem [shape: s32[2,2], index: 3, kind: input, shape index: {}]   ;;  %s322_s4 = inlined_call_operand.hbm [shape: f32[2,2], index: 4, kind: output, shape index: {0}]   ;;  %s323_s5 = inlined_call_operand.hbm [shape: f32[2,2], index: 5, kind: output, shape index: {1}]   ;;  %s324_s6 = inlined_call_operand.vmem [shape: f32[2,2], index: 6, kind: output, shape index: {2}]  }
   0x1   :  { %v24_v0 = vld [vmem:[%s319_s1] sm:$0x3]  ;;  %171 = vmatprep.subr.bf16.mxu0 %v239_v1  ;;  %173 = vmatprep.mubr.msk.bf16.mxu0 %vm240_vm1, %v239_v1 }
   0x2   :  { %v37_v2 = vsel %vm32_vm0, %v24_v0, 0 }
   0x3   :  { %172 = vmatpush3.bf16.xpose.msra.mxu0 %v37_v2 }
   0x4   :  { %13 = vsyncpa [#allocation5], 0  ;;  %v23_v3 = vld [vmem:[%s318_s0] sm:$0x1]  ;;  %vm102_vm2 = vcmask 25616   ;;  %vm80_vm3 = vcmask 9216  }
   0x5   :  { %v167_v4 = vld [vmem:[%s320_s2] ss:$0 sm:$0xff]  ;;  %s241_s0 = smov 126   ;;  %s242_s1 = smov 127  }
   0x6   :  { %s243_s2 = smov [#allocation2]   ;;  %v79_v29 = vld [vmem:[%s321_s3] sm:$0x3] }
   0x7   :  { %s141_s27 = sshll.u32 %s243_s2, 4  ;;  %vm95_vm4 = vcmp.eq.s32.totalorder %v79_v29, 0  ;;  %s142_s27 = int_to_ptr.vmem [resolvable:$true] %s141_s27 }
   0x8   :  { %s195_s30 = scalar_lea.vmem %s142_s27, 32  ;;  %p200_p1 = scmp.lt.s32.totalorder %s142_s27, %s142_s27 }
   0x9   :  { %p196_p0 = scmp.ne.s32.totalorder %s142_s27, %s195_s30  ;;  %p201_p2 = scmp.lt.s32.totalorder %s195_s30, %s195_s30 }
   0xa   :  { %174 = vmatmul.mubr.msk.bf16.vlgmr.msra.gmra.mxu0 %vm32_vm0, %v23_v3 }
   0xb   :  { %p202_p3 = por %p201_p2, %p200_p1 }
   0xd   :  { %p203_p4 = pnand %p202_p3, %p196_p0 }
  0xca   :  { %v73_v5 = vpop.f32.mrf.mxu0 }
  0xcb   :  { %v289_v6 = vadd.f32 %v167_v4, %v73_v5 }
  0xcc   :  { %v175_v7 = vpop.f32.mrf.mxu0 }
  0xcd   :  { %v103_v8 = vsel %vm102_vm2, %v289_v6, -inf  ;;  %v81_v9 = vsel %vm80_vm3, %v289_v6, -inf }
  0xce   :  { %104 = vmax.xlane.f32.xlu0 %v103_v8  ;;  %82 = vmax.xlane.f32.xlu1 %v81_v9  ;;  %v76_v10 = vpop.f32.mrf.mxu0 }
  0xd0   :  { %v176_v11 = vpop.f32.mrf.mxu0 }
 0x157   :  { %v105_v12 = vpop.xlane.xlu0 %104  ;;  %v83_v16 = vpop.xlane.xlu1 %82 }
 0x158   :  { %v106_v13 = vsub.f32 %v289_v6, %v105_v12  ;;  %v84_v17 = vsub.f32 %v289_v6, %v83_v16 }
 0x15a   :  { %v107_v14 = vmul.f32 1.442695, %v106_v13  ;;  %v85_v18 = vmul.f32 1.442695, %v84_v17 }
 0x15c   :  { %183 = vpow2.f32 %v107_v14 }
 0x15d   :  { %185 = vpow2.f32 %v85_v18 }
 0x169   :  { %v184_v15 = vpop.eup %183 }
 0x16a   :  { %110 = vrot.lane.b32.xlu0 %v184_v15, %s241_s0  ;;  %v186_v21 = vpop.eup %185 }
 0x16b   :  { %v87_v22 = vsel %vm80_vm3, %v186_v21, 0.0 }
 0x16e   :  { %121 = vrot.lane.b32.xlu0 %v289_v6, %s241_s0 }
 0x1dc   :  { %v111_v19 = vpop.permute.xlu0 %110 }
 0x1dd   :  { %v113_v20 = vsel %vm80_vm3, %v111_v19, 0.0 }
 0x1de   :  { %114 = vadd.xlane.f32.xlu1 %v113_v20 }
 0x1e0   :  { %v122_v36 = vpop.permute.xlu0 %121 }
 0x1e2   :  { %88 = vadd.xlane.f32.xlu1 %v87_v22 }
 0x1f3   :  { %97 = vrot.lane.b32.xlu1 %v289_v6, %s242_s1 }
 0x267   :  { %v115_v23 = vpop.xlane.xlu1 %114 }
 0x268   :  { %187 = vrcp.f32 %v115_v23 }
 0x269   :  { %189 = vlog2.f32 %v115_v23 }
 0x26b   :  { %v89_v24 = vpop.xlane.xlu1 %88 }
 0x26c   :  { %191 = vrcp.f32 %v89_v24 }
 0x26d   :  { %193 = vlog2.f32 %v89_v24 }
 0x26f   :  { %v98_v35 = vpop.permute.xlu1 %97 }
 0x275   :  { %v188_v25 = vpop.eup %187 }
 0x276   :  { %v190_v26 = vpop.eup %189  ;;  %v117_v27 = vmul.f32 %v188_v25, %v184_v15 }
 0x277   :  { %v119_v28 = vmul.f32 0.6931472, %v190_v26 }
 0x278   :  { %128 = vrot.lane.b32.xlu1 %v117_v27, %s241_s0 }
 0x279   :  { %v192_v30 = vpop.eup %191  ;;  %v120_v34 = vadd.f32 %v119_v28, %v105_v12 }
 0x27a   :  { %v194_v31 = vpop.eup %193  ;;  %v91_v32 = vmul.f32 %v192_v30, %v186_v21 }
 0x27b   :  { %v93_v33 = vmul.f32 0.6931472, %v194_v31 }
 0x27c   :  { %126 = vst.msk [vmem:[#allocation2] sm:$0x3] %vm80_vm3, %v91_v32 }
 0x27d   :  { %v94_v37 = vadd.f32 %v93_v33, %v83_v16 }
 0x27e   :  { %206 = shalt.err (!%p203_p4)
}
 0x27f   :  { %144 = dma.vmem_to_hbm [thread:$0]  %s142_s27, 32, %s322_s4, [#allocation3]   ;;  %vm132_vm5 = vcmask 7168   ;;  %v100_v38 = vsel %vm95_vm4, %v289_v6, %v98_v35  ;;  %v124_v39 = vsel %vm95_vm4, %v98_v35, %v122_v36 }
 0x280   :  { %v101_v40 = vsub.f32 %v94_v37, %v100_v38  ;;  %v125_v41 = vsub.f32 %v120_v34, %v124_v39  ;;  %s244_s10 = smov [#allocation4]  }
 0x281   :  { %s151_s11 = sshll.u32 %s244_s10, 4  ;;  %s152_s11 = int_to_ptr.vmem [resolvable:$true] %s151_s11 }
 0x282   :  { %v133_v42 = vsel %vm132_vm5, %v101_v40, %v125_v41  ;;  %s215_s4 = scalar_lea.vmem %s152_s11, 32  ;;  %p220_p6 = scmp.lt.s32.totalorder %s152_s11, %s152_s11 }
 0x283   :  { %134 = vst.msk [vmem:[%s324_s6] sm:$0x3] %vm80_vm3, %v133_v42  ;;  %p216_p5 = scmp.ne.s32.totalorder %s152_s11, %s215_s4  ;;  %p221_p7 = scmp.lt.s32.totalorder %s215_s4, %s215_s4 }
 0x285   :  { %p222_p8 = por %p221_p7, %p220_p6 }
 0x287   :  { %p223_p9 = pnand %p222_p8, %p216_p5 }
 0x2ea   :  { %v129_v43 = vpop.permute.xlu1 %128 }
 0x2eb   :  { %131 = vst.msk [vmem:[#allocation4] sm:$0x3] %vm80_vm3, %v129_v43 }
 0x2ec   :  { %226 = shalt.err (!%p223_p9)
}
 0x2ed   :  { %154 = dma.vmem_to_hbm [thread:$0]  %s152_s11, 32, %s323_s5, [#allocation5]  }
 0x2ee   :  { %235 = dma.done.wait [#allocation3], 32  }
 0x2ef   :  { %236 = vsyncadd [#allocation3], 4294967264 }
 0x2f0   :  { %237 = dma.done.wait [#allocation5], 32  }
 0x2f1   :  { %238 = vsyncadd [#allocation5], 4294967264 }
 0x2f2   :  { %165 = vsyncpa [#allocation3], 1 }
 0x2f3   :  { %166 = vsyncpa [#allocation5], 1 }

</bundles_post_ra>
